<compile_context>
chip_gen: v7x
topology: tpu7x:2x2x1
jax: 0.10.0
libtpu: 0.0.40
codegen_flags: <defaults>
</compile_context>

<pallas_src>
import jax
import jax.numpy as jnp
from jax.experimental import pallas as pl
from jax.experimental.pallas import tpu as pltpu

IN_DIM = 42
HID_DIM = 64
OUT_DIM = 42
PAD = 128                 # lane width; every weight matrix zero-padded to 128x128
W_ROWS = 3 * PAD          # packed weight slab rows: w1 | w2 | w3
BIAS_ROWS = 8             # one sublane block; rows 0/1/2 hold b1/b2/b3 (f32)


def _round_up(n, m):
    return ((n + m - 1) // m) * m


def dqn_kernel(x_ref, w_ref, b_ref, o_ref):
    """One batch tile of the DQN forward pass.

    x_ref: (TB, 42)   input dtype      (raw rows, no host padding)
    w_ref: (384, 128) compute dtype    (w1 | w2 | w3, zero-padded to 128x128)
    b_ref: (8, 128)   float32          (rows 0/1/2 = b1/b2/b3)
    o_ref: (TB, 42)   out dtype
    """
    # x.float(), then explicitly zero lanes 42..127 (block contents beyond the
    # logical width are not guaranteed zero) before feeding the 128-row w1.
    x = x_ref[...].astype(jnp.float32)
    x = jnp.concatenate(
        [x, jnp.zeros((x.shape[0], PAD - IN_DIM), jnp.float32)], axis=-1)
    x = x.astype(w_ref.dtype)                         # MXU feed dtype

    # Static, 128-row-aligned slices of the resident weight slab (free).
    w1 = w_ref[0 * PAD:1 * PAD, :]
    w2 = w_ref[1 * PAD:2 * PAD, :]
    w3 = w_ref[2 * PAD:3 * PAD, :]
    b = b_ref[...]                                    # f32 biases

    # fc1 + relu  (MXU dot, f32 accumulate, f32 bias / elementwise)
    h = jnp.dot(x, w1, preferred_element_type=jnp.float32) + b[0:1, :]
    h = jnp.maximum(h, 0.0)

    # fc2 + relu
    h = jnp.dot(h.astype(w2.dtype), w2, preferred_element_type=jnp.float32) + b[1:2, :]
    h = jnp.maximum(h, 0.0)

    # fc3 + sigmoid (EUP) -> store only the 42 real output lanes.
    h = jnp.dot(h.astype(w3.dtype), w3, preferred_element_type=jnp.float32) + b[2:3, :]
    y = jax.nn.sigmoid(h)                             # (TB, 128) f32
    o_ref[...] = y[:, :OUT_DIM].astype(o_ref.dtype)


def pack_weight_slab(params, dtype):
    """Pack w1 | w2 | w3 (zero-padded to 128x128 each) into one (384, 128) slab."""
    w1, _, w2, _, w3, _ = params
    slab = jnp.zeros((W_ROWS, PAD), dtype)
    slab = slab.at[0:IN_DIM, 0:HID_DIM].set(w1.astype(dtype))
    slab = slab.at[PAD:PAD + HID_DIM, 0:HID_DIM].set(w2.astype(dtype))
    slab = slab.at[2 * PAD:2 * PAD + HID_DIM, 0:OUT_DIM].set(w3.astype(dtype))
    return slab


def pack_bias_block(params):
    """Biases stay f32 (separate 4 KiB block) so the bias add is f32-precise."""
    _, b1, _, b2, _, b3 = params
    b = jnp.zeros((BIAS_ROWS, PAD), jnp.float32)
    b = b.at[0, 0:HID_DIM].set(b1.astype(jnp.float32))
    b = b.at[1, 0:HID_DIM].set(b2.astype(jnp.float32))
    b = b.at[2, 0:OUT_DIM].set(b3.astype(jnp.float32))
    return b


def dqn_forward(x, params, *, compute_dtype=jnp.bfloat16, out_dtype=jnp.float32,
                max_batch_tile=2048):
    """x: (B, 42) -> (B, 42), matching DQN.forward (sigmoid(fc3(relu(fc2(relu(fc1(x.float())))))))."""
    B = x.shape[0]
    assert x.shape[1] == IN_DIM

    w_slab = pack_weight_slab(params, compute_dtype)
    b_block = pack_bias_block(params)

    # Batch tiling: large tiles for HBM-streaming efficiency, near-full last
    # tile, and >= 2 grid steps on large batches so v7x uses both TensorCores.
    num_tiles = pl.cdiv(B, max_batch_tile)
    if B >= 16:
        num_tiles = max(num_tiles, 2)
    TB = _round_up(pl.cdiv(B, num_tiles), 8)          # sublane-aligned tile
    num_tiles = pl.cdiv(B, TB)

    in_isz = jnp.dtype(x.dtype).itemsize
    w_isz = jnp.dtype(compute_dtype).itemsize
    out_isz = jnp.dtype(out_dtype).itemsize
    cost = pl.CostEstimate(
        flops=2 * B * (IN_DIM * HID_DIM + HID_DIM * HID_DIM + HID_DIM * OUT_DIM),
        transcendentals=B * OUT_DIM,
        bytes_accessed=(B * IN_DIM * in_isz + W_ROWS * PAD * w_isz
                        + BIAS_ROWS * PAD * 4 + B * OUT_DIM * out_isz),
    )

    return pl.pallas_call(
        dqn_kernel,
        out_shape=jax.ShapeDtypeStruct((B, OUT_DIM), out_dtype),
        grid=(num_tiles,),
        in_specs=[
            pl.BlockSpec((TB, IN_DIM), lambda i: (i, 0)),       # raw x rows
            pl.BlockSpec((W_ROWS, PAD), lambda i: (0, 0)),      # resident weight slab
            pl.BlockSpec((BIAS_ROWS, PAD), lambda i: (0, 0)),   # resident f32 biases
        ],
        out_specs=pl.BlockSpec((TB, OUT_DIM), lambda i: (i, 0)),  # direct (TB,42) store
        compiler_params=pltpu.CompilerParams(
            dimension_semantics=("parallel",)),                 # megacore on v7x
        cost_estimate=cost,
    )(x, w_slab, b_block)


def init_params(key):
    """Deterministic PyTorch-style (uniform +/- 1/sqrt(fan_in)) init for nn.Linear."""
    def linear(key, fan_in, fan_out):
        kw, kb = jax.random.split(key)
        bound = 1.0 / jnp.sqrt(fan_in)
        w = jax.random.uniform(kw, (fan_in, fan_out), jnp.float32, -bound, bound)
        b = jax.random.uniform(kb, (fan_out,), jnp.float32, -bound, bound)
        return w, b

    k1, k2, k3 = jax.random.split(key, 3)
    w1, b1 = linear(k1, IN_DIM, HID_DIM)
    w2, b2 = linear(k2, HID_DIM, HID_DIM)
    w3, b3 = linear(k3, HID_DIM, OUT_DIM)
    return w1, b1, w2, b2, w3, b3


def dqn_reference(x, params):
    """Pure-JAX reference for correctness checking."""
    w1, b1, w2, b2, w3, b3 = params
    x = x.astype(jnp.float32)
    h = jax.nn.relu(x @ w1 + b1)
    h = jax.nn.relu(h @ w2 + b2)
    return jax.nn.sigmoid(h @ w3 + b3)


if __name__ == "__main__":
    key = jax.random.PRNGKey(0)
    kx, kp = jax.random.split(key)

    params = init_params(kp)

    batch = 8
    x = jax.random.normal(kx, (batch, IN_DIM), dtype=jnp.float32)
    ref = dqn_reference(x, params)

    # f32 MXU feed: tight match vs the pure-JAX reference.
    out_f32 = jax.block_until_ready(dqn_forward(x, params, compute_dtype=jnp.float32))
    assert out_f32.shape == (batch, OUT_DIM)
    assert jnp.allclose(out_f32, ref, atol=1e-5, rtol=1e-5)

    # Default bf16 MXU feed (f32 accumulate / bias / sigmoid): loose tolerance.
    out_bf16 = jax.block_until_ready(dqn_forward(x, params))
    assert out_bf16.shape == (batch, OUT_DIM)
    assert jnp.allclose(out_bf16, ref, atol=5e-2)

    # Ragged batch (not a multiple of the 8-row sublane tile) exercises the
    # partial final block: OOB reads masked, OOB writes dropped, no host pad.
    x2 = jax.random.normal(kx, (10, IN_DIM), dtype=jnp.float32)
    out2 = jax.block_until_ready(dqn_forward(x2, params, compute_dtype=jnp.float32))
    assert out2.shape == (10, OUT_DIM)
    assert jnp.allclose(out2, dqn_reference(x2, params), atol=1e-5, rtol=1e-5)

    print("KERNEL_OK")
</pallas_src>

<mosaic_0001>
module attributes {stable_mosaic.version = 11 : i64} {
  func.func @dqn_kernel(%arg0: i32, %arg1: memref<8x42xf32, #tpu.memory_space<vmem>>, %arg2: memref<384x128xf32, #tpu.memory_space<vmem>>, %arg3: memref<8x128xf32, #tpu.memory_space<vmem>>, %arg4: memref<8x42xf32, #tpu.memory_space<vmem>>) attributes {dimension_semantics = [#tpu.dimension_semantics<parallel>], iteration_bounds = array<i64: 1>, scalar_prefetch = 0 : i64, scratch_operands = 0 : i64, tpu.core_type = #tpu.core_type<tc>, window_params = [{transform_indices = @transform_0, window_bounds = array<i64: 8, 42>}, {pipeline_mode = #tpu.pipeline_mode<synchronous>, transform_indices = @transform_1, window_bounds = array<i64: 384, 128>}, {pipeline_mode = #tpu.pipeline_mode<synchronous>, transform_indices = @transform_2, window_bounds = array<i64: 8, 128>}, {transform_indices = @transform_3, window_bounds = array<i64: 8, 42>}]} {
    %c0 = arith.constant 0 : index
    %c0_0 = arith.constant 0 : index
    %0 = vector.load %arg1[%c0, %c0_0] : memref<8x42xf32, #tpu.memory_space<vmem>>, vector<8x42xf32>
    %cst = arith.constant 0.000000e+00 : f32
    %1 = vector.broadcast %cst : f32 to vector<8x86xf32>
    %2 = tpu.concatenate %0, %1 in 1 : vector<8x42xf32>, vector<8x86xf32> -> vector<8x128xf32>
    %c0_1 = arith.constant 0 : index
    %c0_2 = arith.constant 0 : index
    %3 = vector.load %arg2[%c0_1, %c0_2] : memref<384x128xf32, #tpu.memory_space<vmem>>, vector<128x128xf32>
    %c128 = arith.constant 128 : index
    %c0_3 = arith.constant 0 : index
    %4 = vector.load %arg2[%c128, %c0_3] : memref<384x128xf32, #tpu.memory_space<vmem>>, vector<128x128xf32>
    %c256 = arith.constant 256 : index
    %c0_4 = arith.constant 0 : index
    %5 = vector.load %arg2[%c256, %c0_4] : memref<384x128xf32, #tpu.memory_space<vmem>>, vector<128x128xf32>
    %c0_5 = arith.constant 0 : index
    %c0_6 = arith.constant 0 : index
    %6 = vector.load %arg3[%c0_5, %c0_6] : memref<8x128xf32, #tpu.memory_space<vmem>>, vector<8x128xf32>
    %cst_7 = arith.constant dense<0.000000e+00> : vector<8x128xf32>
    %7 = tpu.matmul %2, %3, %cst_7 {dimension_numbers = #tpu.dot_dimension_numbers<[1], [0], [0], [1], [0, 0, 1, 1], [], []>} : vector<8x128xf32>, vector<128x128xf32>, vector<8x128xf32> -> vector<8x128xf32>
    %8 = vector.extract_strided_slice %6 {offsets = [0, 0], sizes = [1, 128], strides = [1, 1]} : vector<8x128xf32> to vector<1x128xf32>
    %9 = vector.broadcast %8 : vector<1x128xf32> to vector<8x128xf32>
    %10 = arith.addf %7, %9 : vector<8x128xf32>
    %cst_8 = arith.constant 0.000000e+00 : f32
    %11 = vector.broadcast %cst_8 : f32 to vector<8x128xf32>
    %12 = arith.maximumf %10, %11 : vector<8x128xf32>
    %cst_9 = arith.constant dense<0.000000e+00> : vector<8x128xf32>
    %13 = tpu.matmul %12, %4, %cst_9 {dimension_numbers = #tpu.dot_dimension_numbers<[1], [0], [0], [1], [0, 0, 1, 1], [], []>} : vector<8x128xf32>, vector<128x128xf32>, vector<8x128xf32> -> vector<8x128xf32>
    %14 = vector.extract_strided_slice %6 {offsets = [1, 0], sizes = [1, 128], strides = [1, 1]} : vector<8x128xf32> to vector<1x128xf32>
    %15 = vector.broadcast %14 : vector<1x128xf32> to vector<8x128xf32>
    %16 = arith.addf %13, %15 : vector<8x128xf32>
    %cst_10 = arith.constant 0.000000e+00 : f32
    %17 = vector.broadcast %cst_10 : f32 to vector<8x128xf32>
    %18 = arith.maximumf %16, %17 : vector<8x128xf32>
    %cst_11 = arith.constant dense<0.000000e+00> : vector<8x128xf32>
    %19 = tpu.matmul %18, %5, %cst_11 {dimension_numbers = #tpu.dot_dimension_numbers<[1], [0], [0], [1], [0, 0, 1, 1], [], []>} : vector<8x128xf32>, vector<128x128xf32>, vector<8x128xf32> -> vector<8x128xf32>
    %20 = vector.extract_strided_slice %6 {offsets = [2, 0], sizes = [1, 128], strides = [1, 1]} : vector<8x128xf32> to vector<1x128xf32>
    %21 = vector.broadcast %20 : vector<1x128xf32> to vector<8x128xf32>
    %22 = arith.addf %19, %21 : vector<8x128xf32>
    %23 = arith.negf %22 : vector<8x128xf32>
    %24 = math.exp %23 : vector<8x128xf32>
    %cst_12 = arith.constant 1.000000e+00 : f32
    %25 = vector.broadcast %cst_12 : f32 to vector<8x128xf32>
    %26 = arith.addf %25, %24 : vector<8x128xf32>
    %27 = arith.divf %25, %26 : vector<8x128xf32>
    %28 = vector.extract_strided_slice %27 {offsets = [0, 0], sizes = [8, 42], strides = [1, 1]} : vector<8x128xf32> to vector<8x42xf32>
    %c0_13 = arith.constant 0 : index
    %c0_14 = arith.constant 0 : index
    %29 = vector.load %arg4[%c0_13, %c0_14] : memref<8x42xf32, #tpu.memory_space<vmem>>, vector<8x42xf32>
    tpu.vector_store %arg4[%c0_13, %c0_14], %28 {strides = array<i32>} : memref<8x42xf32, #tpu.memory_space<vmem>>, vector<8x42xf32>,
    return
  }
  func.func @transform_0(%arg0: i32) -> (i32, i32) {
    %c0_i32 = arith.constant 0 : i32
    %c0_i32_0 = arith.constant 0 : i32
    return %arg0, %c0_i32 : i32, i32
  }
  func.func @transform_1(%arg0: i32) -> (i32, i32) {
    %c0_i32 = arith.constant 0 : i32
    %c0_i32_0 = arith.constant 0 : i32
    %c0_i32_1 = arith.constant 0 : i32
    return %c0_i32, %c0_i32_0 : i32, i32
  }
  func.func @transform_2(%arg0: i32) -> (i32, i32) {
    %c0_i32 = arith.constant 0 : i32
    %c0_i32_0 = arith.constant 0 : i32
    %c0_i32_1 = arith.constant 0 : i32
    return %c0_i32, %c0_i32_0 : i32, i32
  }
  func.func @transform_3(%arg0: i32) -> (i32, i32) {
    %c0_i32 = arith.constant 0 : i32
    %c0_i32_0 = arith.constant 0 : i32
    return %arg0, %c0_i32 : i32, i32
  }
}

</mosaic_0001>

<bundles_post_ra>
// kernel: tpu_custom_call.1
= control target key start
LH: loop header
LB: loop body
LE: loop exit
PB: predicated region body
PF: predicated region fallthrough
CT: control target
= control target key end

     0   :  { %8 = vsyncpa [#allocation3], 0  ;;  %s797_s0 = inlined_call_operand.hbm [shape: f32[8,42], index: 0, kind: input, shape index: {}]   ;;  %s798_s1 = inlined_call_operand.hbm [shape: f32[384,128], index: 1, kind: input, shape index: {}]   ;;  %s799_s2 = inlined_call_operand.hbm [shape: f32[8,128], index: 2, kind: input, shape index: {}]   ;;  %s800_s3 = inlined_call_operand.hbm [shape: f32[8,42], index: 3, kind: output, shape index: {}]  }
   0x1   :  { %9 = vsyncpa [#allocation6], 0 }
   0x2   :  { %10 = vsyncpa [#allocation4], 0  ;;  %s688_s12 = smov [#allocation5]   ;;  %s594_s16 = scalar_lea.hbm %s798_s1, 6144 }
   0x3   :  { %s26_s13 = sshll.u32 %s688_s12, 4  ;;  %p595_p0 = scmp.ne.s32.totalorder %s798_s1, %s594_s16  ;;  %s27_s13 = int_to_ptr.vmem [resolvable:$true] %s26_s13 }
   0x4   :  { %p598_p1 = scmp.lt.u32.totalorder %s594_s16, %s798_s1 }
   0x6   :  { %p600_p2 = pnand %p598_p1, %p595_p0 }
   0x8   :  { %603 = shalt.err (!%p600_p2)
}
   0x9   :  { %s604_s21 = scalar_lea.vmem %s27_s13, 6144  ;;  %p609_p4 = scmp.lt.s32.totalorder %s27_s13, %s27_s13 }
   0xa   :  { %p605_p3 = scmp.ne.s32.totalorder %s27_s13, %s604_s21  ;;  %p610_p5 = scmp.lt.s32.totalorder %s604_s21, %s604_s21 }
   0xc   :  { %p611_p6 = por %p610_p5, %p609_p4 }
   0xe   :  { %p612_p7 = pnand %p611_p6, %p605_p3 }
  0x10   :  { %615 = shalt.err (!%p612_p7)
}
  0x11   :  { %s689_s22 = smov 128   ;;  %s690_s23 = smov 8  }
  0x12   :  { %32 = dma.hbm_to_vmem [thread:$0]  %s798_s1, 6144, %s27_s13, [#allocation6], %s689_s22, %s689_s22, %s690_s23  }
  0x13   :  { %s691_s26 = smov [#allocation2]   ;;  %s692_s28 = smov [#allocation7]  }
  0x14   :  { %s17_s27 = sshll.u32 %s691_s26, 4  ;;  %s39_s29 = sshll.u32 %s692_s28, 4  ;;  %s18_s27 = int_to_ptr.vmem [resolvable:$true] %s17_s27  ;;  %s40_s29 = int_to_ptr.vmem [resolvable:$true] %s39_s29 }
  0x15   :  { %s616_s5 = scalar_lea.hbm %s797_s0, 128 }
  0x16   :  { %p617_p8 = scmp.ne.s32.totalorder %s797_s0, %s616_s5  ;;  %p620_p9 = scmp.lt.u32.totalorder %s616_s5, %s797_s0 }
  0x18   :  { %p622_p10 = pnand %p620_p9, %p617_p8 }
  0x1a   :  { %625 = shalt.err (!%p622_p10)
}
  0x1b   :  { %s626_s1 = scalar_lea.vmem %s18_s27, 128  ;;  %p631_p12 = scmp.lt.s32.totalorder %s18_s27, %s18_s27 }
  0x1c   :  { %p627_p11 = scmp.ne.s32.totalorder %s18_s27, %s626_s1  ;;  %p632_p13 = scmp.lt.s32.totalorder %s626_s1, %s626_s1 }
  0x1e   :  { %p633_p0 = por %p632_p13, %p631_p12 }
  0x20   :  { %p634_p1 = pnand %p633_p0, %p627_p11 }
  0x22   :  { %637 = shalt.err (!%p634_p1)
}
  0x23   :  { %20 = dma.hbm_to_vmem [thread:$0]  %s797_s0, 128, %s18_s27, [#allocation3]  }
  0x24   :  { %s638_s14 = scalar_lea.hbm %s799_s2, 128 }
  0x25   :  { %p639_p2 = scmp.ne.s32.totalorder %s799_s2, %s638_s14  ;;  %p642_p3 = scmp.lt.u32.totalorder %s638_s14, %s799_s2 }
  0x27   :  { %p644_p4 = pnand %p642_p3, %p639_p2 }
  0x29   :  { %647 = shalt.err (!%p644_p4)
}
  0x2a   :  { %s648_s19 = scalar_lea.vmem %s40_s29, 128  ;;  %p653_p6 = scmp.lt.s32.totalorder %s40_s29, %s40_s29 }
  0x2b   :  { %p649_p5 = scmp.ne.s32.totalorder %s40_s29, %s648_s19  ;;  %p654_p7 = scmp.lt.s32.totalorder %s648_s19, %s648_s19 }
  0x2d   :  { %p655_p8 = por %p654_p7, %p653_p6 }
  0x2f   :  { %p656_p9 = pnand %p655_p8, %p649_p5 }
  0x31   :  { %659 = shalt.err (!%p656_p9)
}
  0x32   :  { %42 = dma.hbm_to_vmem [thread:$0]  %s799_s2, 128, %s40_s29, [#allocation6]  }
  0x33   :  { %682 = dma.done.wait [#allocation3], 128  }
  0x34   :  { %683 = vsyncadd [#allocation3], 4294967168 }
  0x35   :  { %684 = dma.done.wait [#allocation6], 6272  }
  0x36   :  { %685 = vsyncadd [#allocation6], 4294961024  ;;  %v693_v0 = vmov 0.0|0.0   ;;  %vm694_vm0 = vmmov 0   ;;  %v695_v1 = vmov 0.0   ;;  %v55_v2 = vld [vmem:[#allocation5] sm:$0xff] }
  0x37   :  { %509 = vmatprep.subr.bf16.mxu0 %v693_v0  ;;  %436 = vmatprep.mubr.msk.f32.mxu0 %vm694_vm0, %v695_v1  ;;  %v56_v3 = vld [vmem:[#allocation5 + $0x8] sm:$0xff]  ;;  %v57_v4 = vld [vmem:[#allocation5 + $0x10] sm:$0xff]  ;;  %v58_v6 = vld [vmem:[#allocation5 + $0x18] sm:$0xff]  ;;  %vm53_vm1 = vcmask 343040   ;;  %s696_s2 = smov [#allocation8]  }
  0x38   :  { %533 = vmatprep.subr.bf16.mxu1 %v693_v0  ;;  %471 = vmatprep.mubr.msk.f32.mxu1 %vm694_vm0, %v695_v1  ;;  %v510_v5 = vpack.c.bf16 %v56_v3, %v55_v2  ;;  %v513_v7 = vpack.c.bf16 %v58_v6, %v57_v4  ;;  %v59_v8 = vld [vmem:[#allocation5 + $0x20] sm:$0xff]  ;;  %v60_v9 = vld [vmem:[#allocation5 + $0x28] sm:$0xff]  ;;  %v73_v12 = vld [vmem:[#allocation5 + $0x90] sm:$0xff]  ;;  %s341_s21 = sshll.u32 %s696_s2, 4  ;;  %s342_s21 = int_to_ptr.vmem [resolvable:$true] %s341_s21 }
  0x39   :  { %v71_v10 = vld [vmem:[#allocation5 + $0x80] sm:$0xff]  ;;  %v72_v11 = vld [vmem:[#allocation5 + $0x88] sm:$0xff]  ;;  %v74_v13 = vld [vmem:[#allocation5 + $0x98] sm:$0xff]  ;;  %v516_v14 = vpack.c.bf16 %v60_v9, %v59_v8  ;;  %v104_v9 = vlaneseq  ;;  %s660_s22 = scalar_lea.vmem %s342_s21, 128  ;;  %p665_p11 = scmp.lt.s32.totalorder %s342_s21, %s342_s21 }
  0x3a   :  { %511 = vmatpush3.bf16.msra.mxu0 %v510_v5  ;;  %v534_v15 = vpack.c.bf16 %v72_v11, %v71_v10  ;;  %v61_v16 = vld [vmem:[#allocation5 + $0x30] sm:$0xff]  ;;  %v62_v17 = vld [vmem:[#allocation5 + $0x38] sm:$0xff]  ;;  %v537_v18 = vpack.c.bf16 %v74_v13, %v73_v12  ;;  %v75_v19 = vld [vmem:[#allocation5 + $0xa0] sm:$0xff]  ;;  %p661_p10 = scmp.ne.s32.totalorder %s342_s21, %s660_s22  ;;  %p666_p12 = scmp.lt.s32.totalorder %s660_s22, %s660_s22 }
  0x3b   :  { %512 = vmatprep.subr.bf16.mxu0 %v693_v0  ;;  %v76_v20 = vld [vmem:[#allocation5 + $0xa8] sm:$0xff]  ;;  %v519_v21 = vpack.c.bf16 %v62_v17, %v61_v16  ;;  %v63_v22 = vld [vmem:[#allocation5 + $0x40] sm:$0xff]  ;;  %v77_v25 = vld [vmem:[#allocation5 + $0xb0] sm:$0xff]  ;;  %v105_v10 = vshrl.u32 %v104_v9, 7 }
  0x3c   :  { %535 = vmatpush3.bf16.msra.mxu1 %v534_v15  ;;  %v64_v23 = vld [vmem:[#allocation5 + $0x48] sm:$0xff]  ;;  %v540_v24 = vpack.c.bf16 %v76_v20, %v75_v19  ;;  %v78_v26 = vld [vmem:[#allocation5 + $0xb8] sm:$0xff]  ;;  %v65_v28 = vld [vmem:[#allocation5 + $0x50] sm:$0xff]  ;;  %p667_p13 = por %p666_p12, %p665_p11 }
  0x3d   :  { %536 = vmatprep.subr.bf16.mxu1 %v693_v0  ;;  %v522_v27 = vpack.c.bf16 %v64_v23, %v63_v22  ;;  %v66_v29 = vld [vmem:[#allocation5 + $0x58] sm:$0xff]  ;;  %v543_v30 = vpack.c.bf16 %v78_v26, %v77_v25  ;;  %v79_v31 = vld [vmem:[#allocation5 + $0xc0] sm:$0xff]  ;;  %v80_v32 = vld [vmem:[#allocation5 + $0xc8] sm:$0xff]  ;;  %v106_v11 = vsub.s32 0, %v105_v10  ;;  %v256_v26 = vsub.s32 2, %v105_v10 }
  0x3e   :  { %514 = vmatpush3.bf16.msra.mxu0 %v513_v7  ;;  %v525_v33 = vpack.c.bf16 %v66_v29, %v65_v28  ;;  %v67_v34 = vld [vmem:[#allocation5 + $0x60] sm:$0xff]  ;;  %v68_v35 = vld [vmem:[#allocation5 + $0x68] sm:$0xff]  ;;  %v546_v36 = vpack.c.bf16 %v80_v32, %v79_v31  ;;  %v81_v37 = vld [vmem:[#allocation5 + $0xd0] sm:$0xff]  ;;  %p668_p0 = pnand %p667_p13, %p661_p10 }
  0x3f   :  { %515 = vmatprep.subr.bf16.mxu0 %v693_v0  ;;  %v82_v38 = vld [vmem:[#allocation5 + $0xd8] sm:$0xff]  ;;  %v528_v39 = vpack.c.bf16 %v68_v35, %v67_v34  ;;  %v69_v40 = vld [vmem:[#allocation5 + $0x70] sm:$0xff]  ;;  %v83_v43 = vld [vmem:[#allocation5 + $0xe0] sm:$0xff] }
  0x40   :  { %538 = vmatpush3.bf16.msra.mxu1 %v537_v18  ;;  %v70_v41 = vld [vmem:[#allocation5 + $0x78] sm:$0xff]  ;;  %v549_v42 = vpack.c.bf16 %v82_v38, %v81_v37  ;;  %v84_v44 = vld [vmem:[#allocation5 + $0xe8] sm:$0xff]  ;;  %v85_v48 = vld [vmem:[#allocation5 + $0xf0] sm:$0xff] }
  0x41   :  { %539 = vmatprep.subr.bf16.mxu1 %v693_v0  ;;  %v531_v45 = vpack.c.bf16 %v70_v41, %v69_v40  ;;  %v552_v46 = vpack.c.bf16 %v84_v44, %v83_v43  ;;  %v52_v47 = vld [vmem:[#allocation2] sm:$0xff]  ;;  %v87_v51 = vld [vmem:[#allocation5 + $0x100] sm:$0xff]  ;;  %v88_v52 = vld [vmem:[#allocation5 + $0x108] sm:$0xff] }
  0x42   :  { %517 = vmatpush3.bf16.msra.mxu0 %v516_v14  ;;  %v86_v49 = vld [vmem:[#allocation5 + $0xf8] sm:$0xff]  ;;  %v89_v53 = vld [vmem:[#allocation5 + $0x110] sm:$0xff]  ;;  %v558_v54 = vpack.c.bf16 %v88_v52, %v87_v51  ;;  %v91_v57 = vld [vmem:[#allocation5 + $0x120] sm:$0xff] }
  0x43   :  { %518 = vmatprep.subr.bf16.mxu0 %v693_v0  ;;  %v555_v50 = vpack.c.bf16 %v86_v49, %v85_v48  ;;  %v90_v55 = vld [vmem:[#allocation5 + $0x118] sm:$0xff]  ;;  %v92_v58 = vld [vmem:[#allocation5 + $0x128] sm:$0xff]  ;;  %v93_v60 = vld [vmem:[#allocation5 + $0x130] sm:$0xff] }
  0x44   :  { %541 = vmatpush3.bf16.msra.mxu1 %v540_v24  ;;  %v561_v56 = vpack.c.bf16 %v90_v55, %v89_v53  ;;  %v564_v59 = vpack.c.bf16 %v92_v58, %v91_v57  ;;  %v94_v61 = vld [vmem:[#allocation5 + $0x138] sm:$0xff]  ;;  %v95_v63 = vld [vmem:[#allocation5 + $0x140] sm:$0xff]  ;;  %v97_v3 = vld [vmem:[#allocation5 + $0x150] sm:$0xff] }
  0x45   :  { %542 = vmatprep.subr.bf16.mxu1 %v693_v0  ;;  %v567_v62 = vpack.c.bf16 %v94_v61, %v93_v60  ;;  %v98_v4 = vld [vmem:[#allocation5 + $0x158] sm:$0xff]  ;;  %v99_v6 = vld [vmem:[#allocation5 + $0x160] sm:$0xff]  ;;  %v100_v7 = vld [vmem:[#allocation5 + $0x168] sm:$0xff] }
  0x46   :  { %520 = vmatpush3.bf16.msra.mxu0 %v519_v21  ;;  %v573_v5 = vpack.c.bf16 %v98_v4, %v97_v3  ;;  %v576_v8 = vpack.c.bf16 %v100_v7, %v99_v6  ;;  %v103_v12 = vld [vmem:[#allocation7] sm:$0xff]  ;;  %v101_v18 = vld [vmem:[#allocation5 + $0x170] sm:$0xff]  ;;  %v102_v19 = vld [vmem:[#allocation5 + $0x178] sm:$0xff]  ;;  %v181_v21 = vsub.s32 1, %v105_v10 }
  0x47   :  { %521 = vmatprep.subr.bf16.mxu0 %v693_v0  ;;  %v107_v13 = vrot.slane %v103_v12, %v106_v11  ;;  %v579_v20 = vpack.c.bf16 %v102_v19, %v101_v18 }
  0x48   :  { %544 = vmatpush3.bf16.msra.mxu1 %v543_v30  ;;  %v182_v22 = vrot.slane %v103_v12, %v181_v21 }
  0x49   :  { %545 = vmatprep.subr.bf16.mxu1 %v693_v0 }
  0x4a   :  { %523 = vmatpush3.bf16.msra.mxu0 %v522_v27  ;;  %v257_v27 = vrot.slane %v103_v12, %v256_v26 }
  0x4b   :  { %524 = vmatprep.subr.bf16.mxu0 %v693_v0 }
  0x4c   :  { %547 = vmatpush3.bf16.msra.mxu1 %v546_v36 }
  0x4d   :  { %548 = vmatprep.subr.bf16.mxu1 %v693_v0 }
  0x4e   :  { %526 = vmatpush3.bf16.msra.mxu0 %v525_v33 }
  0x4f   :  { %527 = vmatprep.subr.bf16.mxu0 %v693_v0 }
  0x50   :  { %550 = vmatpush3.bf16.msra.mxu1 %v549_v42 }
  0x51   :  { %551 = vmatprep.subr.bf16.mxu1 %v693_v0 }
  0x52   :  { %529 = vmatpush3.bf16.msra.mxu0 %v528_v39 }
  0x53   :  { %530 = vmatprep.subr.bf16.mxu0 %v693_v0 }
  0x54   :  { %553 = vmatpush3.bf16.msra.mxu1 %v552_v46 }
  0x55   :  { %554 = vmatprep.subr.bf16.mxu1 %v693_v0 }
  0x56   :  { %532 = vmatpush3.bf16.msra.mxu0 %v531_v45 }
  0x57   :  { %557 = vmatprep.subr.bf16.mxu0 %v693_v0 }
  0x58   :  { %556 = vmatpush3.bf16.msra.mxu1 %v555_v50 }
  0x59   :  { %437 = vmatmul.mubr.msk.f32.vlgmr.msra.gmra.mrb[0].mxu0 %vm53_vm1, %v52_v47 }
  0x5a   :  { %506 = vmatprep.mubr.msk.f32.mxu0 %vm694_vm0, %v695_v1  ;;  %559 = vmatpush3.bf16.msra.mxu0 %v558_v54  ;;  %v96_v1 = vld [vmem:[#allocation5 + $0x148] sm:$0xff] }
  0x5b   :  { %560 = vmatprep.subr.bf16.mxu0 %v693_v0  ;;  %v570_v2 = vpack.c.bf16 %v96_v1, %v95_v63 }
  0x5e   :  { %562 = vmatpush3.bf16.msra.mxu0 %v561_v56 }
  0x5f   :  { %563 = vmatprep.subr.bf16.mxu0 %v693_v0 }
  0x62   :  { %565 = vmatpush3.bf16.msra.mxu0 %v564_v59 }
  0x63   :  { %566 = vmatprep.subr.bf16.mxu0 %v693_v0 }
  0x66   :  { %568 = vmatpush3.bf16.msra.mxu0 %v567_v62 }
  0x67   :  { %569 = vmatprep.subr.bf16.mxu0 %v693_v0 }
  0x6a   :  { %571 = vmatpush3.bf16.msra.mxu0 %v570_v2 }
  0x6b   :  { %572 = vmatprep.subr.bf16.mxu0 %v693_v0 }
  0x6e   :  { %574 = vmatpush3.bf16.msra.mxu0 %v573_v5 }
  0x6f   :  { %575 = vmatprep.subr.bf16.mxu0 %v693_v0 }
  0x72   :  { %577 = vmatpush3.bf16.msra.mxu0 %v576_v8 }
  0x73   :  { %578 = vmatprep.subr.bf16.mxu0 %v693_v0 }
  0x76   :  { %580 = vmatpush3.bf16.msra.mxu0 %v579_v20 }
 0x12c   :  { %v174_v14 = vpop.f32.mrb[0].mxu0 }
 0x12d   :  { %v175_v15 = vadd.f32 %v174_v14, %v107_v13  ;;  %v438_v16 = vpop.f32.mrb[1].mxu0 }
 0x12f   :  { %v178_v17 = vmax.f32 %v175_v15, 0.0 }
 0x131   :  { %472 = vmatmul.mubr.f32.vlgmr.msra.gmra.mrb[0].mxu1 %v178_v17 }
 0x204   :  { %v249_v23 = vpop.f32.mrb[0].mxu1 }
 0x205   :  { %v250_v24 = vadd.f32 %v249_v23, %v182_v22  ;;  %v473_v25 = vpop.f32.mrb[1].mxu1 }
 0x207   :  { %v253_v0 = vmax.f32 %v250_v24, 0.0 }
 0x209   :  { %507 = vmatmul.mubr.f32.vlgmr.msra.gmra.mrb[2].mxu0 %v253_v0 }
 0x2dc   :  { %v324_v28 = vpop.f32.mrb[2].mxu0 }
 0x2dd   :  { %v325_v29 = vadd.f32 %v324_v28, %v257_v27  ;;  %v508_v30 = vpop.f32.mrb[3].mxu0 }
 0x2df   :  { %v352_v31 = vmul.f32 -1.442695, %v325_v29 }
 0x2e1   :  { %590 = vpow2.f32 %v352_v31 }
 0x2eb   :  { %v591_v32 = vpop.eup %590 }
 0x2ec   :  { %v331_v33 = vadd.f32 1.0, %v591_v32 }
 0x2ee   :  { %592 = vrcp.f32 %v331_v33 }
 0x2f8   :  { %v593_v34 = vpop.eup %592 }
 0x2f9   :  { %334 = vst.msk [vmem:[#allocation8] sm:$0xff] %vm53_vm1, %v593_v34 }
 0x2fa   :  { %671 = shalt.err (!%p668_p0)
}
 0x2fb   :  { %s672_s25 = scalar_lea.hbm %s800_s3, 128 }
 0x2fc   :  { %p673_p1 = scmp.ne.s32.totalorder %s800_s3, %s672_s25  ;;  %p676_p2 = scmp.lt.u32.totalorder %s672_s25, %s800_s3 }
 0x2fe   :  { %p678_p3 = pnand %p676_p2, %p673_p1 }
 0x300   :  { %681 = shalt.err (!%p678_p3)
}
 0x301   :  { %344 = dma.vmem_to_hbm [thread:$0]  %s342_s21, 128, %s800_s3, [#allocation4]  }
 0x302   :  { %686 = dma.done.wait [#allocation4], 128  }
 0x303   :  { %687 = vsyncadd [#allocation4], 4294967168 }
 0x304   :  { %348 = vsyncpa [#allocation3], 1 }
 0x305   :  { %349 = vsyncpa [#allocation6], 1 }
 0x306   :  { %350 = vsyncpa [#allocation4], 1 }

</bundles_post_ra>
